<compile_context>
chip_gen: v6e
topology: v6e:2x2x1
jax: 0.10.0
libtpu: 0.0.40
codegen_flags: <defaults>
</compile_context>

<pallas_src>
import jax
import jax.numpy as jnp
from jax.experimental import pallas as pl
from jax.experimental.pallas import tpu as pltpu

TOKEN_LENGTH = 32  # vocab_size in the PyTorch module


def _binary_embedding_kernel(binary_ref, w_ref, emb_ref):
    # binary_ref: (ts, B)    0/1 values for this sequence block
    # w_ref     : (B, B*H)   block-diagonal table expansion, VMEM-resident
    # emb_ref   : (ts, B*H)  lane-dense embeddings block
    amp = binary_ref[...] * 2.0 - 1.0                              # (ts, B)  VPU
    # emb2d[s, b*H + h] = amp[s, b] * table[b, h]  (single nonzero term/elem)
    emb_ref[...] = jnp.dot(amp, w_ref[...],
                           preferred_element_type=jnp.float32)     # MXU


def binary_embedding_forward(binary_input, embed_table, *, block_rows=512):
    """binary_input: (S, B) 0/1 values; embed_table: (vocab, H).

    Returns (embeddings (S, B, H) f32, logit_prime (S, B, 1) f32).
    """
    S, B = binary_input.shape
    vocab, H = embed_table.shape
    assert B <= vocab, "binary_len must not exceed vocab_size (token_length)"

    binary_input = binary_input.astype(jnp.float32)
    table = embed_table[:B].astype(jnp.float32)          # rows 0..B-1 (arange lookup)

    # Block-diagonal expansion: W[b, b*H:(b+1)*H] = table[b]   -> (B, B*H)
    w = (jnp.eye(B, dtype=jnp.float32)[:, :, None] * table[:, None, :]).reshape(B, B * H)

    # Sequence-axis tile.  512 rows -> 8 MiB f32 output block; double-buffered
    # output + resident W + binary blocks ≈ 17 MiB, inside the explicit 32 MiB
    # VMEM limit on every TPU generation.
    ts = min(block_rows, S)
    if ts < S:
        ts = max(8, (ts // 8) * 8)            # (8, 128) block-shape rule
    n_blocks = pl.cdiv(S, ts)                 # ragged final block is masked on writeback

    emb2d = pl.pallas_call(
        _binary_embedding_kernel,
        out_shape=jax.ShapeDtypeStruct((S, B * H), jnp.float32),
        grid=(n_blocks,),
        in_specs=[
            pl.BlockSpec((ts, B), lambda i: (i, 0)),         # binary block
            pl.BlockSpec((B, B * H), lambda i: (0, 0)),      # W, resident across steps
        ],
        out_specs=pl.BlockSpec((ts, B * H), lambda i: (i, 0)),
        compiler_params=pltpu.CompilerParams(
            dimension_semantics=("parallel",),               # independent S blocks
            vmem_limit_bytes=32 * 1024 * 1024,
        ),
        cost_estimate=pl.CostEstimate(
            flops=2 * S * B * B * H,
            transcendentals=0,
            bytes_accessed=S * B * H * 4 + S * B * 4 + B * B * H * 4,
        ),
    )(binary_input, w)

    emb = emb2d.reshape(S, B, H)              # layout-compatible split of last dim

    # logit_prime[s, b] = sum_h(table[b, h] * amp[s, b]) = amp[s, b] * rowsum[b]
    # (exact for ±1 amplitudes).  Tiny elementwise op kept out of the kernel so
    # its lane-width-32 store never touches the kernel's write pipeline.
    amp = binary_input * 2.0 - 1.0
    row_sum = jnp.sum(table, axis=-1)                          # (B,)
    logit_prime = (amp * row_sum[None, :]).reshape(S, B, 1)

    return emb, logit_prime


def reference_forward(binary_input, embed_table):
    S, B = binary_input.shape
    amp = binary_input * 2.0 - 1.0
    base = embed_table[:B, :][None, :, :]                      # (1, B, H)
    emb = base * amp[:, :, None]
    return emb, jnp.sum(emb, axis=2, keepdims=True)


if __name__ == "__main__":
    embed_size = 128
    binary_len = TOKEN_LENGTH  # 32

    key = jax.random.PRNGKey(0)
    k_table, k_bits = jax.random.split(key)

    # Deterministic parameter init (nn.Embedding -> N(0, 1) weights).
    embed_table = jax.random.normal(
        k_table, (TOKEN_LENGTH, embed_size), dtype=jnp.float32)

    # --- check 1: small shape, single grid block -----------------------------
    seq_len = 8
    binary_input = jax.random.bernoulli(
        k_bits, p=0.5, shape=(seq_len, binary_len)).astype(jnp.float32)

    emb, logit_prime = binary_embedding_forward(binary_input, embed_table)
    emb = jax.block_until_ready(emb)
    logit_prime = jax.block_until_ready(logit_prime)

    emb_ref, logit_ref = reference_forward(binary_input, embed_table)
    assert emb.shape == (seq_len, binary_len, embed_size)
    assert logit_prime.shape == (seq_len, binary_len, 1)
    assert jnp.allclose(emb, emb_ref, atol=1e-5, rtol=1e-5)
    assert jnp.allclose(logit_prime, logit_ref, atol=1e-4, rtol=1e-5)

    # --- check 2: ragged multi-block grid (S % block_rows != 0, masked tail) --
    seq_len2 = 300
    binary_input2 = jax.random.bernoulli(
        jax.random.PRNGKey(1), p=0.5,
        shape=(seq_len2, binary_len)).astype(jnp.float32)

    emb2, logit2 = binary_embedding_forward(
        binary_input2, embed_table, block_rows=128)
    emb2 = jax.block_until_ready(emb2)
    logit2 = jax.block_until_ready(logit2)

    emb2_ref, logit2_ref = reference_forward(binary_input2, embed_table)
    assert emb2.shape == (seq_len2, binary_len, embed_size)
    assert logit2.shape == (seq_len2, binary_len, 1)
    assert jnp.allclose(emb2, emb2_ref, atol=1e-5, rtol=1e-5)
    assert jnp.allclose(logit2, logit2_ref, atol=1e-4, rtol=1e-5)

    print("KERNEL_OK")
</pallas_src>

<mosaic_0001>
module attributes {stable_mosaic.version = 11 : i64} {
  func.func @_binary_embedding_kernel(%arg0: i32, %arg1: memref<8x32xf32, #tpu.memory_space<vmem>>, %arg2: memref<32x4096xf32, #tpu.memory_space<vmem>>, %arg3: memref<8x4096xf32, #tpu.memory_space<vmem>>) attributes {dimension_semantics = [#tpu.dimension_semantics<parallel>], iteration_bounds = array<i64: 1>, scalar_prefetch = 0 : i64, scratch_operands = 0 : i64, tpu.core_type = #tpu.core_type<tc>, window_params = [{transform_indices = @transform_0, window_bounds = array<i64: 8, 32>}, {pipeline_mode = #tpu.pipeline_mode<synchronous>, transform_indices = @transform_1, window_bounds = array<i64: 32, 4096>}, {transform_indices = @transform_2, window_bounds = array<i64: 8, 4096>}]} {
    %c0 = arith.constant 0 : index
    %c0_0 = arith.constant 0 : index
    %0 = vector.load %arg1[%c0, %c0_0] : memref<8x32xf32, #tpu.memory_space<vmem>>, vector<8x32xf32>
    %cst = arith.constant 2.000000e+00 : f32
    %1 = vector.broadcast %cst : f32 to vector<8x32xf32>
    %2 = arith.mulf %0, %1 : vector<8x32xf32>
    %cst_1 = arith.constant 1.000000e+00 : f32
    %3 = vector.broadcast %cst_1 : f32 to vector<8x32xf32>
    %4 = arith.subf %2, %3 : vector<8x32xf32>
    %c0_2 = arith.constant 0 : index
    %c0_3 = arith.constant 0 : index
    %5 = vector.load %arg2[%c0_2, %c0_3] : memref<32x4096xf32, #tpu.memory_space<vmem>>, vector<32x4096xf32>
    %cst_4 = arith.constant dense<0.000000e+00> : vector<8x4096xf32>
    %6 = tpu.matmul %4, %5, %cst_4 {dimension_numbers = #tpu.dot_dimension_numbers<[1], [0], [0], [1], [0, 0, 1, 1], [], []>} : vector<8x32xf32>, vector<32x4096xf32>, vector<8x4096xf32> -> vector<8x4096xf32>
    %c0_5 = arith.constant 0 : index
    %c0_6 = arith.constant 0 : index
    %7 = vector.load %arg3[%c0_5, %c0_6] : memref<8x4096xf32, #tpu.memory_space<vmem>>, vector<8x4096xf32>
    tpu.vector_store %arg3[%c0_5, %c0_6], %6 {strides = array<i32>} : memref<8x4096xf32, #tpu.memory_space<vmem>>, vector<8x4096xf32>,
    return
  }
  func.func @transform_0(%arg0: i32) -> (i32, i32) {
    %c0_i32 = arith.constant 0 : i32
    %c0_i32_0 = arith.constant 0 : i32
    return %arg0, %c0_i32 : i32, i32
  }
  func.func @transform_1(%arg0: i32) -> (i32, i32) {
    %c0_i32 = arith.constant 0 : i32
    %c0_i32_0 = arith.constant 0 : i32
    %c0_i32_1 = arith.constant 0 : i32
    return %c0_i32, %c0_i32_0 : i32, i32
  }
  func.func @transform_2(%arg0: i32) -> (i32, i32) {
    %c0_i32 = arith.constant 0 : i32
    %c0_i32_0 = arith.constant 0 : i32
    return %arg0, %c0_i32 : i32, i32
  }
}

</mosaic_0001>

<bundles_post_ra>
// kernel: tpu_custom_call.1
= control target key start
LH: loop header
LB: loop body
LE: loop exit
PB: predicated region body
PF: predicated region fallthrough
CT: control target
= control target key end

     0   :  { %7 = vsyncpa [#allocation3], 0  ;;  %s1526_s0 = inlined_call_operand.hbm [shape: f32[8,32], index: 0, kind: input, shape index: {}]   ;;  %s1527_s1 = inlined_call_operand.hbm [shape: f32[32,4096], index: 1, kind: input, shape index: {}]   ;;  %s1528_s2 = inlined_call_operand.hbm [shape: f32[8,4096], index: 2, kind: output, shape index: {}]  }
   0x1   :  { %8 = vsyncpa [#allocation6], 0 }
   0x2   :  { %9 = vsyncpa [#allocation4], 0  ;;  %s1446_s9 = smov [#allocation2]   ;;  %s1447_s11 = smov [#allocation5]  }
   0x3   :  { %s16_s10 = sshll.u32 %s1446_s9, 4  ;;  %s25_s12 = sshll.u32 %s1447_s11, 4  ;;  %s17_s10 = int_to_ptr.vmem [resolvable:$true] %s16_s10  ;;  %s26_s12 = int_to_ptr.vmem [resolvable:$true] %s25_s12 }
   0x4   :  { %s1388_s13 = scalar_lea.vmem %s17_s10, 128  ;;  %p1393_p1 = scmp.lt.s32.totalorder %s17_s10, %s17_s10 }
   0x5   :  { %p1389_p0 = scmp.ne.s32.totalorder %s17_s10, %s1388_s13  ;;  %p1394_p2 = scmp.lt.s32.totalorder %s1388_s13, %s1388_s13 }
   0x7   :  { %p1395_p3 = por %p1394_p2, %p1393_p1 }
   0x9   :  { %p1396_p4 = pnand %p1395_p3, %p1389_p0 }
   0xb   :  { %1399 = shalt.err (!%p1396_p4)
}
   0xc   :  { %19 = dma.hbm_to_vmem [thread:$0]  %s1526_s0, 128, %s17_s10, [#allocation3]  }
   0xd   :  { %s1408_s16 = scalar_lea.vmem %s26_s12, 16384  ;;  %p1413_p6 = scmp.lt.s32.totalorder %s26_s12, %s26_s12 }
   0xe   :  { %p1409_p5 = scmp.ne.s32.totalorder %s26_s12, %s1408_s16  ;;  %p1414_p7 = scmp.lt.s32.totalorder %s1408_s16, %s1408_s16 }
  0x10   :  { %p1415_p8 = por %p1414_p7, %p1413_p6 }
  0x12   :  { %p1416_p9 = pnand %p1415_p8, %p1409_p5 }
  0x14   :  { %1419 = shalt.err (!%p1416_p9)
}
  0x15   :  { %s1448_s17 = smov 4096   ;;  %s1449_s18 = smov 256  }
  0x16   :  { %31 = dma.hbm_to_vmem [thread:$0]  %s1527_s1, 16384, %s26_s12, [#allocation6], %s1448_s17, %s1448_s17, %s1449_s18  }
  0x17   :  { %1440 = dma.done.wait [#allocation3], 128  }
  0x18   :  { %1441 = vsyncadd [#allocation3], 4294967168 }
  0x19   :  { %1442 = dma.done.wait [#allocation6], 16384  }
  0x1a   :  { %1443 = vsyncadd [#allocation6], 4294950912  ;;  %v1450_v0 = vmov 0.0   ;;  %v138_v1 = vld [vmem:[#allocation5 + $0x308] sm:$0xff]  ;;  %v140_v2 = vld [vmem:[#allocation5 + $0x318] sm:$0xff]  ;;  %vm169_vm0 = vcmask 261120  }
  0x1b   :  { %237 = vmatprep.mubr.f32.mxu0 %v1450_v0  ;;  %308 = vmatprep.mubr.f32.mxu1 %v1450_v0  ;;  %v137_v3 = vld [vmem:[#allocation5 + $0x300] sm:$0xff]  ;;  %v139_v4 = vld [vmem:[#allocation5 + $0x310] sm:$0xff]  ;;  %v106_v5 = vld [vmem:[#allocation5 + $0x208] sm:$0xff]  ;;  %s1451_s0 = smov [#allocation7]  }
  0x1c   :  { %197 = vmatprep.subr.mxu0 %v138_v1  ;;  %268 = vmatprep.subr.mxu1 %v140_v2  ;;  %v108_v6 = vld [vmem:[#allocation5 + $0x218] sm:$0xff]  ;;  %v105_v7 = vld [vmem:[#allocation5 + $0x200] sm:$0xff]  ;;  %v107_v8 = vld [vmem:[#allocation5 + $0x210] sm:$0xff]  ;;  %s1347_s1 = sshll.u32 %s1451_s0, 4  ;;  %s1348_s1 = int_to_ptr.vmem [resolvable:$true] %s1347_s1 }
  0x1d   :  { %198 = vmatpush1.msra.mxu0 %v137_v3  ;;  %269 = vmatpush1.msra.mxu1 %v139_v4  ;;  %v74_v9 = vld [vmem:[#allocation5 + $0x108] sm:$0xff]  ;;  %v76_v10 = vld [vmem:[#allocation5 + $0x118] sm:$0xff]  ;;  %v73_v11 = vld [vmem:[#allocation5 + $0x100] sm:$0xff]  ;;  %s1420_s21 = scalar_lea.vmem %s1348_s1, 4096  ;;  %p1425_p11 = scmp.lt.s32.totalorder %s1348_s1, %s1348_s1 }
  0x1e   :  { %199 = vmatprep.subr.mxu0 %v106_v5  ;;  %270 = vmatprep.subr.mxu1 %v108_v6  ;;  %v75_v12 = vld [vmem:[#allocation5 + $0x110] sm:$0xff]  ;;  %v42_v13 = vld [vmem:[#allocation5 + $0x8] sm:$0xff]  ;;  %v44_v14 = vld [vmem:[#allocation5 + $0x18] sm:$0xff]  ;;  %p1421_p10 = scmp.ne.s32.totalorder %s1348_s1, %s1420_s21  ;;  %p1426_p12 = scmp.lt.s32.totalorder %s1420_s21, %s1420_s21 }
  0x1f   :  { %200 = vmatpush1.msra.mxu0 %v105_v7  ;;  %271 = vmatpush1.msra.mxu1 %v107_v8  ;;  %v41_v15 = vld [vmem:[#allocation5] sm:$0xff]  ;;  %v43_v16 = vld [vmem:[#allocation5 + $0x10] sm:$0xff]  ;;  %v38_v17 = vld [vmem:[#allocation2] sm:$0xff] }
  0x20   :  { %201 = vmatprep.subr.mxu0 %v74_v9  ;;  %272 = vmatprep.subr.mxu1 %v76_v10  ;;  %v39_v18 = vmul.f32 2.0, %v38_v17  ;;  %v142_v19 = vld [vmem:[#allocation5 + $0x328] sm:$0xff]  ;;  %v144_v20 = vld [vmem:[#allocation5 + $0x338] sm:$0xff]  ;;  %v141_v22 = vld [vmem:[#allocation5 + $0x320] sm:$0xff]  ;;  %p1427_p13 = por %p1426_p12, %p1425_p11 }
  0x21   :  { %202 = vmatpush1.msra.mxu0 %v73_v11  ;;  %273 = vmatpush1.msra.mxu1 %v75_v12  ;;  %v143_v23 = vld [vmem:[#allocation5 + $0x330] sm:$0xff]  ;;  %v110_v24 = vld [vmem:[#allocation5 + $0x228] sm:$0xff]  ;;  %v112_v25 = vld [vmem:[#allocation5 + $0x238] sm:$0xff] }
  0x22   :  { %203 = vmatprep.subr.mxu0 %v42_v13  ;;  %274 = vmatprep.subr.mxu1 %v44_v14  ;;  %v1475_v21 = vadd.f32 -1.0, %v39_v18  ;;  %v109_v26 = vld [vmem:[#allocation5 + $0x220] sm:$0xff]  ;;  %v111_v27 = vld [vmem:[#allocation5 + $0x230] sm:$0xff]  ;;  %v78_v28 = vld [vmem:[#allocation5 + $0x128] sm:$0xff]  ;;  %p1428_p0 = pnand %p1427_p13, %p1421_p10 }
  0x23   :  { %204 = vmatpush1.msra.mxu0 %v41_v15  ;;  %275 = vmatpush1.msra.mxu1 %v43_v16  ;;  %v80_v29 = vld [vmem:[#allocation5 + $0x138] sm:$0xff]  ;;  %v77_v30 = vld [vmem:[#allocation5 + $0x120] sm:$0xff]  ;;  %v79_v31 = vld [vmem:[#allocation5 + $0x130] sm:$0xff] }
  0x24   :  { %339 = vmatprep.subr.mxu0 %v142_v19  ;;  %410 = vmatprep.subr.mxu1 %v144_v20  ;;  %v46_v32 = vld [vmem:[#allocation5 + $0x28] sm:$0xff]  ;;  %v48_v33 = vld [vmem:[#allocation5 + $0x38] sm:$0xff]  ;;  %v45_v34 = vld [vmem:[#allocation5 + $0x20] sm:$0xff] }
  0x25   :  { %1358 = vmatmul.mubr.msk.f32.vlgmr.msra.gmra.mxu0 %vm169_vm0, %v1475_v21  ;;  %1359 = vmatmul.mubr.msk.f32.vlgmr.msra.gmra.mxu1 %vm169_vm0, %v1475_v21  ;;  %v47_v35 = vld [vmem:[#allocation5 + $0x30] sm:$0xff]  ;;  %v146_v36 = vld [vmem:[#allocation5 + $0x348] sm:$0xff]  ;;  %v148_v37 = vld [vmem:[#allocation5 + $0x358] sm:$0xff] }
  0x26   :  { %340 = vmatpush1.msra.mxu0 %v141_v22  ;;  %411 = vmatpush1.msra.mxu1 %v143_v23  ;;  %v145_v38 = vld [vmem:[#allocation5 + $0x340] sm:$0xff]  ;;  %v147_v39 = vld [vmem:[#allocation5 + $0x350] sm:$0xff]  ;;  %v114_v40 = vld [vmem:[#allocation5 + $0x248] sm:$0xff] }
  0x27   :  { %341 = vmatprep.subr.mxu0 %v110_v24  ;;  %412 = vmatprep.subr.mxu1 %v112_v25  ;;  %v116_v41 = vld [vmem:[#allocation5 + $0x258] sm:$0xff]  ;;  %v113_v42 = vld [vmem:[#allocation5 + $0x240] sm:$0xff]  ;;  %v115_v43 = vld [vmem:[#allocation5 + $0x250] sm:$0xff] }
  0x28   :  { %342 = vmatpush1.msra.mxu0 %v109_v26  ;;  %413 = vmatpush1.msra.mxu1 %v111_v27  ;;  %v82_v44 = vld [vmem:[#allocation5 + $0x148] sm:$0xff]  ;;  %v84_v45 = vld [vmem:[#allocation5 + $0x158] sm:$0xff]  ;;  %v81_v46 = vld [vmem:[#allocation5 + $0x140] sm:$0xff] }
  0x29   :  { %343 = vmatprep.subr.mxu0 %v78_v28  ;;  %414 = vmatprep.subr.mxu1 %v80_v29  ;;  %v83_v47 = vld [vmem:[#allocation5 + $0x150] sm:$0xff]  ;;  %v50_v48 = vld [vmem:[#allocation5 + $0x48] sm:$0xff]  ;;  %v52_v49 = vld [vmem:[#allocation5 + $0x58] sm:$0xff] }
  0x2a   :  { %344 = vmatpush1.msra.mxu0 %v77_v30  ;;  %415 = vmatpush1.msra.mxu1 %v79_v31  ;;  %v49_v50 = vld [vmem:[#allocation5 + $0x40] sm:$0xff]  ;;  %v51_v51 = vld [vmem:[#allocation5 + $0x50] sm:$0xff]  ;;  %v150_v52 = vld [vmem:[#allocation5 + $0x368] sm:$0xff] }
  0x2b   :  { %345 = vmatprep.subr.mxu0 %v46_v32  ;;  %416 = vmatprep.subr.mxu1 %v48_v33  ;;  %v152_v53 = vld [vmem:[#allocation5 + $0x378] sm:$0xff]  ;;  %v149_v54 = vld [vmem:[#allocation5 + $0x360] sm:$0xff]  ;;  %v151_v55 = vld [vmem:[#allocation5 + $0x370] sm:$0xff] }
  0x2c   :  { %346 = vmatpush1.msra.mxu0 %v45_v34  ;;  %379 = vmatprep.mubr.f32.mxu0 %v1450_v0  ;;  %v118_v56 = vld [vmem:[#allocation5 + $0x268] sm:$0xff]  ;;  %v120_v57 = vld [vmem:[#allocation5 + $0x278] sm:$0xff]  ;;  %v117_v58 = vld [vmem:[#allocation5 + $0x260] sm:$0xff] }
  0x2d   :  { %417 = vmatpush1.msra.mxu1 %v47_v35  ;;  %450 = vmatprep.mubr.f32.mxu1 %v1450_v0  ;;  %v119_v59 = vld [vmem:[#allocation5 + $0x270] sm:$0xff]  ;;  %v86_v60 = vld [vmem:[#allocation5 + $0x168] sm:$0xff]  ;;  %v88_v61 = vld [vmem:[#allocation5 + $0x178] sm:$0xff] }
  0x2e   :  { %1360 = vmatmul.mubr.msk.f32.vlgmr.msra.gmra.mxu0 %vm169_vm0, %v1475_v21  ;;  %1361 = vmatmul.mubr.msk.f32.vlgmr.msra.gmra.mxu1 %vm169_vm0, %v1475_v21  ;;  %v85_v62 = vld [vmem:[#allocation5 + $0x160] sm:$0xff]  ;;  %v87_v63 = vld [vmem:[#allocation5 + $0x170] sm:$0xff]  ;;  %v54_v1 = vld [vmem:[#allocation5 + $0x68] sm:$0xff] }
  0x2f   :  { %481 = vmatprep.subr.mxu0 %v146_v36  ;;  %552 = vmatprep.subr.mxu1 %v148_v37  ;;  %v56_v2 = vld [vmem:[#allocation5 + $0x78] sm:$0xff]  ;;  %v53_v3 = vld [vmem:[#allocation5 + $0x60] sm:$0xff]  ;;  %v55_v4 = vld [vmem:[#allocation5 + $0x70] sm:$0xff] }
  0x30   :  { %482 = vmatpush1.msra.mxu0 %v145_v38  ;;  %553 = vmatpush1.msra.mxu1 %v147_v39  ;;  %v154_v5 = vld [vmem:[#allocation5 + $0x388] sm:$0xff]  ;;  %v156_v6 = vld [vmem:[#allocation5 + $0x398] sm:$0xff]  ;;  %v153_v7 = vld [vmem:[#allocation5 + $0x380] sm:$0xff] }
  0x31   :  { %483 = vmatprep.subr.mxu0 %v114_v40  ;;  %554 = vmatprep.subr.mxu1 %v116_v41  ;;  %v155_v8 = vld [vmem:[#allocation5 + $0x390] sm:$0xff]  ;;  %v122_v9 = vld [vmem:[#allocation5 + $0x288] sm:$0xff]  ;;  %v124_v10 = vld [vmem:[#allocation5 + $0x298] sm:$0xff] }
  0x32   :  { %484 = vmatpush1.msra.mxu0 %v113_v42  ;;  %555 = vmatpush1.msra.mxu1 %v115_v43  ;;  %v121_v11 = vld [vmem:[#allocation5 + $0x280] sm:$0xff]  ;;  %v123_v12 = vld [vmem:[#allocation5 + $0x290] sm:$0xff]  ;;  %v90_v13 = vld [vmem:[#allocation5 + $0x188] sm:$0xff] }
  0x33   :  { %485 = vmatprep.subr.mxu0 %v82_v44  ;;  %556 = vmatprep.subr.mxu1 %v84_v45  ;;  %v92_v14 = vld [vmem:[#allocation5 + $0x198] sm:$0xff]  ;;  %v89_v15 = vld [vmem:[#allocation5 + $0x180] sm:$0xff]  ;;  %v91_v16 = vld [vmem:[#allocation5 + $0x190] sm:$0xff] }
  0x34   :  { %486 = vmatpush1.msra.mxu0 %v81_v46  ;;  %557 = vmatpush1.msra.mxu1 %v83_v47  ;;  %v58_v17 = vld [vmem:[#allocation5 + $0x88] sm:$0xff]  ;;  %v60_v18 = vld [vmem:[#allocation5 + $0x98] sm:$0xff]  ;;  %v57_v19 = vld [vmem:[#allocation5 + $0x80] sm:$0xff] }
  0x35   :  { %487 = vmatprep.subr.mxu0 %v50_v48  ;;  %558 = vmatprep.subr.mxu1 %v52_v49  ;;  %v59_v20 = vld [vmem:[#allocation5 + $0x90] sm:$0xff]  ;;  %v158_v22 = vld [vmem:[#allocation5 + $0x3a8] sm:$0xff]  ;;  %v160_v23 = vld [vmem:[#allocation5 + $0x3b8] sm:$0xff] }
  0x36   :  { %488 = vmatpush1.msra.mxu0 %v49_v50  ;;  %521 = vmatprep.mubr.f32.mxu0 %v1450_v0  ;;  %v157_v24 = vld [vmem:[#allocation5 + $0x3a0] sm:$0xff]  ;;  %v159_v25 = vld [vmem:[#allocation5 + $0x3b0] sm:$0xff]  ;;  %v126_v26 = vld [vmem:[#allocation5 + $0x2a8] sm:$0xff] }
  0x37   :  { %559 = vmatpush1.msra.mxu1 %v51_v51  ;;  %592 = vmatprep.mubr.f32.mxu1 %v1450_v0  ;;  %v128_v27 = vld [vmem:[#allocation5 + $0x2b8] sm:$0xff]  ;;  %v125_v28 = vld [vmem:[#allocation5 + $0x2a0] sm:$0xff]  ;;  %v127_v29 = vld [vmem:[#allocation5 + $0x2b0] sm:$0xff] }
  0x38   :  { %1362 = vmatmul.mubr.msk.f32.vlgmr.msra.gmra.mxu0 %vm169_vm0, %v1475_v21  ;;  %1363 = vmatmul.mubr.msk.f32.vlgmr.msra.gmra.mxu1 %vm169_vm0, %v1475_v21  ;;  %v94_v30 = vld [vmem:[#allocation5 + $0x1a8] sm:$0xff]  ;;  %v96_v31 = vld [vmem:[#allocation5 + $0x1b8] sm:$0xff]  ;;  %v93_v32 = vld [vmem:[#allocation5 + $0x1a0] sm:$0xff] }
  0x39   :  { %623 = vmatprep.subr.mxu0 %v150_v52  ;;  %694 = vmatprep.subr.mxu1 %v152_v53  ;;  %v95_v33 = vld [vmem:[#allocation5 + $0x1b0] sm:$0xff]  ;;  %v62_v34 = vld [vmem:[#allocation5 + $0xa8] sm:$0xff]  ;;  %v64_v35 = vld [vmem:[#allocation5 + $0xb8] sm:$0xff] }
  0x3a   :  { %624 = vmatpush1.msra.mxu0 %v149_v54  ;;  %695 = vmatpush1.msra.mxu1 %v151_v55  ;;  %v61_v36 = vld [vmem:[#allocation5 + $0xa0] sm:$0xff]  ;;  %v63_v37 = vld [vmem:[#allocation5 + $0xb0] sm:$0xff]  ;;  %v162_v38 = vld [vmem:[#allocation5 + $0x3c8] sm:$0xff] }
  0x3b   :  { %625 = vmatprep.subr.mxu0 %v118_v56  ;;  %696 = vmatprep.subr.mxu1 %v120_v57  ;;  %v164_v39 = vld [vmem:[#allocation5 + $0x3d8] sm:$0xff]  ;;  %v161_v40 = vld [vmem:[#allocation5 + $0x3c0] sm:$0xff]  ;;  %v163_v41 = vld [vmem:[#allocation5 + $0x3d0] sm:$0xff] }
  0x3c   :  { %626 = vmatpush1.msra.mxu0 %v117_v58  ;;  %697 = vmatpush1.msra.mxu1 %v119_v59  ;;  %v130_v42 = vld [vmem:[#allocation5 + $0x2c8] sm:$0xff]  ;;  %v132_v43 = vld [vmem:[#allocation5 + $0x2d8] sm:$0xff]  ;;  %v129_v44 = vld [vmem:[#allocation5 + $0x2c0] sm:$0xff] }
  0x3d   :  { %627 = vmatprep.subr.mxu0 %v86_v60  ;;  %698 = vmatprep.subr.mxu1 %v88_v61  ;;  %v131_v45 = vld [vmem:[#allocation5 + $0x2d0] sm:$0xff]  ;;  %v98_v46 = vld [vmem:[#allocation5 + $0x1c8] sm:$0xff]  ;;  %v100_v47 = vld [vmem:[#allocation5 + $0x1d8] sm:$0xff] }
  0x3e   :  { %628 = vmatpush1.msra.mxu0 %v85_v62  ;;  %699 = vmatpush1.msra.mxu1 %v87_v63  ;;  %v97_v48 = vld [vmem:[#allocation5 + $0x1c0] sm:$0xff]  ;;  %v99_v49 = vld [vmem:[#allocation5 + $0x1d0] sm:$0xff]  ;;  %v66_v50 = vld [vmem:[#allocation5 + $0xc8] sm:$0xff] }
  0x3f   :  { %629 = vmatprep.subr.mxu0 %v54_v1  ;;  %700 = vmatprep.subr.mxu1 %v56_v2  ;;  %v68_v51 = vld [vmem:[#allocation5 + $0xd8] sm:$0xff]  ;;  %v65_v52 = vld [vmem:[#allocation5 + $0xc0] sm:$0xff]  ;;  %v67_v53 = vld [vmem:[#allocation5 + $0xd0] sm:$0xff] }
  0x40   :  { %630 = vmatpush1.msra.mxu0 %v53_v3  ;;  %663 = vmatprep.mubr.f32.mxu0 %v1450_v0  ;;  %v166_v54 = vld [vmem:[#allocation5 + $0x3e8] sm:$0xff]  ;;  %v168_v55 = vld [vmem:[#allocation5 + $0x3f8] sm:$0xff]  ;;  %v165_v56 = vld [vmem:[#allocation5 + $0x3e0] sm:$0xff] }
  0x41   :  { %701 = vmatpush1.msra.mxu1 %v55_v4  ;;  %734 = vmatprep.mubr.f32.mxu1 %v1450_v0  ;;  %v167_v57 = vld [vmem:[#allocation5 + $0x3f0] sm:$0xff]  ;;  %v134_v58 = vld [vmem:[#allocation5 + $0x2e8] sm:$0xff]  ;;  %v136_v59 = vld [vmem:[#allocation5 + $0x2f8] sm:$0xff] }
  0x42   :  { %1364 = vmatmul.mubr.msk.f32.vlgmr.msra.gmra.mxu0 %vm169_vm0, %v1475_v21  ;;  %1365 = vmatmul.mubr.msk.f32.vlgmr.msra.gmra.mxu1 %vm169_vm0, %v1475_v21  ;;  %v133_v60 = vld [vmem:[#allocation5 + $0x2e0] sm:$0xff]  ;;  %v135_v61 = vld [vmem:[#allocation5 + $0x2f0] sm:$0xff]  ;;  %v102_v62 = vld [vmem:[#allocation5 + $0x1e8] sm:$0xff] }
  0x43   :  { %765 = vmatprep.subr.mxu0 %v154_v5  ;;  %836 = vmatprep.subr.mxu1 %v156_v6  ;;  %v104_v63 = vld [vmem:[#allocation5 + $0x1f8] sm:$0xff]  ;;  %v101_v1 = vld [vmem:[#allocation5 + $0x1e0] sm:$0xff]  ;;  %v103_v2 = vld [vmem:[#allocation5 + $0x1f0] sm:$0xff] }
  0x44   :  { %766 = vmatpush1.msra.mxu0 %v153_v7  ;;  %837 = vmatpush1.msra.mxu1 %v155_v8  ;;  %v70_v3 = vld [vmem:[#allocation5 + $0xe8] sm:$0xff]  ;;  %v72_v4 = vld [vmem:[#allocation5 + $0xf8] sm:$0xff]  ;;  %v69_v5 = vld [vmem:[#allocation5 + $0xe0] sm:$0xff] }
  0x45   :  { %767 = vmatprep.subr.mxu0 %v122_v9  ;;  %838 = vmatprep.subr.mxu1 %v124_v10  ;;  %v71_v6 = vld [vmem:[#allocation5 + $0xf0] sm:$0xff] }
  0x46   :  { %768 = vmatpush1.msra.mxu0 %v121_v11  ;;  %839 = vmatpush1.msra.mxu1 %v123_v12 }
  0x47   :  { %769 = vmatprep.subr.mxu0 %v90_v13  ;;  %840 = vmatprep.subr.mxu1 %v92_v14 }
  0x48   :  { %770 = vmatpush1.msra.mxu0 %v89_v15  ;;  %841 = vmatpush1.msra.mxu1 %v91_v16 }
  0x49   :  { %771 = vmatprep.subr.mxu0 %v58_v17  ;;  %842 = vmatprep.subr.mxu1 %v60_v18 }
  0x4a   :  { %772 = vmatpush1.msra.mxu0 %v57_v19  ;;  %805 = vmatprep.mubr.f32.mxu0 %v1450_v0 }
  0x4b   :  { %843 = vmatpush1.msra.mxu1 %v59_v20  ;;  %876 = vmatprep.mubr.f32.mxu1 %v1450_v0 }
  0x4c   :  { %1366 = vmatmul.mubr.msk.f32.vlgmr.msra.gmra.mxu0 %vm169_vm0, %v1475_v21  ;;  %1367 = vmatmul.mubr.msk.f32.vlgmr.msra.gmra.mxu1 %vm169_vm0, %v1475_v21 }
  0x4d   :  { %907 = vmatprep.subr.mxu0 %v158_v22  ;;  %978 = vmatprep.subr.mxu1 %v160_v23 }
  0x4e   :  { %908 = vmatpush1.msra.mxu0 %v157_v24  ;;  %979 = vmatpush1.msra.mxu1 %v159_v25 }
  0x4f   :  { %909 = vmatprep.subr.mxu0 %v126_v26  ;;  %980 = vmatprep.subr.mxu1 %v128_v27 }
  0x50   :  { %910 = vmatpush1.msra.mxu0 %v125_v28  ;;  %981 = vmatpush1.msra.mxu1 %v127_v29 }
  0x51   :  { %911 = vmatprep.subr.mxu0 %v94_v30  ;;  %982 = vmatprep.subr.mxu1 %v96_v31 }
  0x52   :  { %912 = vmatpush1.msra.mxu0 %v93_v32  ;;  %983 = vmatpush1.msra.mxu1 %v95_v33 }
  0x53   :  { %913 = vmatprep.subr.mxu0 %v62_v34  ;;  %984 = vmatprep.subr.mxu1 %v64_v35 }
  0x54   :  { %914 = vmatpush1.msra.mxu0 %v61_v36  ;;  %947 = vmatprep.mubr.f32.mxu0 %v1450_v0 }
  0x55   :  { %985 = vmatpush1.msra.mxu1 %v63_v37  ;;  %1018 = vmatprep.mubr.f32.mxu1 %v1450_v0 }
  0x56   :  { %1368 = vmatmul.mubr.msk.f32.vlgmr.msra.gmra.mxu0 %vm169_vm0, %v1475_v21  ;;  %1369 = vmatmul.mubr.msk.f32.vlgmr.msra.gmra.mxu1 %vm169_vm0, %v1475_v21 }
  0x57   :  { %1049 = vmatprep.subr.mxu0 %v162_v38  ;;  %1120 = vmatprep.subr.mxu1 %v164_v39 }
  0x58   :  { %1050 = vmatpush1.msra.mxu0 %v161_v40  ;;  %1121 = vmatpush1.msra.mxu1 %v163_v41 }
  0x59   :  { %1051 = vmatprep.subr.mxu0 %v130_v42  ;;  %1122 = vmatprep.subr.mxu1 %v132_v43 }
  0x5a   :  { %1052 = vmatpush1.msra.mxu0 %v129_v44  ;;  %1123 = vmatpush1.msra.mxu1 %v131_v45 }
  0x5b   :  { %1053 = vmatprep.subr.mxu0 %v98_v46  ;;  %1124 = vmatprep.subr.mxu1 %v100_v47 }
  0x5c   :  { %1054 = vmatpush1.msra.mxu0 %v97_v48  ;;  %1125 = vmatpush1.msra.mxu1 %v99_v49 }
  0x5d   :  { %1055 = vmatprep.subr.mxu0 %v66_v50  ;;  %1126 = vmatprep.subr.mxu1 %v68_v51 }
  0x5e   :  { %1056 = vmatpush1.msra.mxu0 %v65_v52  ;;  %1089 = vmatprep.mubr.f32.mxu0 %v1450_v0 }
  0x5f   :  { %1127 = vmatpush1.msra.mxu1 %v67_v53  ;;  %1160 = vmatprep.mubr.f32.mxu1 %v1450_v0 }
  0x60   :  { %1370 = vmatmul.mubr.msk.f32.vlgmr.msra.gmra.mxu0 %vm169_vm0, %v1475_v21  ;;  %1371 = vmatmul.mubr.msk.f32.vlgmr.msra.gmra.mxu1 %vm169_vm0, %v1475_v21 }
  0x61   :  { %1191 = vmatprep.subr.mxu0 %v166_v54  ;;  %1262 = vmatprep.subr.mxu1 %v168_v55 }
  0x62   :  { %1192 = vmatpush1.msra.mxu0 %v165_v56  ;;  %1263 = vmatpush1.msra.mxu1 %v167_v57 }
  0x63   :  { %1193 = vmatprep.subr.mxu0 %v134_v58  ;;  %1264 = vmatprep.subr.mxu1 %v136_v59 }
  0x64   :  { %1194 = vmatpush1.msra.mxu0 %v133_v60  ;;  %1265 = vmatpush1.msra.mxu1 %v135_v61 }
  0x65   :  { %1195 = vmatprep.subr.mxu0 %v102_v62  ;;  %1266 = vmatprep.subr.mxu1 %v104_v63 }
  0x66   :  { %1196 = vmatpush1.msra.mxu0 %v101_v1  ;;  %1267 = vmatpush1.msra.mxu1 %v103_v2 }
  0x67   :  { %1197 = vmatprep.subr.mxu0 %v70_v3  ;;  %1268 = vmatprep.subr.mxu1 %v72_v4 }
  0x68   :  { %1198 = vmatpush1.msra.mxu0 %v69_v5  ;;  %1231 = vmatprep.mubr.f32.mxu0 %v1450_v0 }
  0x69   :  { %1269 = vmatpush1.msra.mxu1 %v71_v6  ;;  %1302 = vmatprep.mubr.f32.mxu1 %v1450_v0 }
  0x6a   :  { %1372 = vmatmul.mubr.msk.f32.vlgmr.msra.gmra.mxu0 %vm169_vm0, %v1475_v21  ;;  %1373 = vmatmul.mubr.msk.f32.vlgmr.msra.gmra.mxu1 %vm169_vm0, %v1475_v21 }
  0xe5   :  { %v239_v7 = vpop.f32.mrf.mxu0  ;;  %v310_v8 = vpop.f32.mrf.mxu1 }
  0xe6   :  { %1309 = vst [vmem:[#allocation7] sm:$0xff] %v239_v7  ;;  %1311 = vst [vmem:[#allocation7 + $0x10] sm:$0xff] %v310_v8 }
  0xe7   :  { %v241_v9 = vpop.f32.mrf.mxu0  ;;  %v312_v10 = vpop.f32.mrf.mxu1 }
  0xe8   :  { %1310 = vst [vmem:[#allocation7 + $0x8] sm:$0xff] %v241_v9  ;;  %1312 = vst [vmem:[#allocation7 + $0x18] sm:$0xff] %v312_v10 }
  0xee   :  { %v381_v11 = vpop.f32.mrf.mxu0  ;;  %v452_v12 = vpop.f32.mrf.mxu1 }
  0xef   :  { %1313 = vst [vmem:[#allocation7 + $0x20] sm:$0xff] %v381_v11  ;;  %1315 = vst [vmem:[#allocation7 + $0x30] sm:$0xff] %v452_v12 }
  0xf0   :  { %v383_v13 = vpop.f32.mrf.mxu0  ;;  %v454_v0 = vpop.f32.mrf.mxu1 }
  0xf1   :  { %1314 = vst [vmem:[#allocation7 + $0x28] sm:$0xff] %v383_v13  ;;  %1316 = vst [vmem:[#allocation7 + $0x38] sm:$0xff] %v454_v0 }
  0xf8   :  { %v523_v14 = vpop.f32.mrf.mxu0  ;;  %v594_v15 = vpop.f32.mrf.mxu1 }
  0xf9   :  { %1317 = vst [vmem:[#allocation7 + $0x40] sm:$0xff] %v523_v14  ;;  %1319 = vst [vmem:[#allocation7 + $0x50] sm:$0xff] %v594_v15 }
  0xfa   :  { %v525_v21 = vpop.f32.mrf.mxu0  ;;  %v596_v16 = vpop.f32.mrf.mxu1 }
  0xfb   :  { %1318 = vst [vmem:[#allocation7 + $0x48] sm:$0xff] %v525_v21  ;;  %1320 = vst [vmem:[#allocation7 + $0x58] sm:$0xff] %v596_v16 }
 0x102   :  { %v665_v17 = vpop.f32.mrf.mxu0  ;;  %v736_v18 = vpop.f32.mrf.mxu1 }
 0x103   :  { %1321 = vst [vmem:[#allocation7 + $0x60] sm:$0xff] %v665_v17  ;;  %1323 = vst [vmem:[#allocation7 + $0x70] sm:$0xff] %v736_v18 }
 0x104   :  { %v667_v19 = vpop.f32.mrf.mxu0  ;;  %v738_v20 = vpop.f32.mrf.mxu1 }
 0x105   :  { %1322 = vst [vmem:[#allocation7 + $0x68] sm:$0xff] %v667_v19  ;;  %1324 = vst [vmem:[#allocation7 + $0x78] sm:$0xff] %v738_v20 }
 0x10c   :  { %v807_v22 = vpop.f32.mrf.mxu0  ;;  %v878_v23 = vpop.f32.mrf.mxu1 }
 0x10d   :  { %1325 = vst [vmem:[#allocation7 + $0x80] sm:$0xff] %v807_v22  ;;  %1327 = vst [vmem:[#allocation7 + $0x90] sm:$0xff] %v878_v23 }
 0x10e   :  { %v809_v24 = vpop.f32.mrf.mxu0  ;;  %v880_v25 = vpop.f32.mrf.mxu1 }
 0x10f   :  { %1326 = vst [vmem:[#allocation7 + $0x88] sm:$0xff] %v809_v24  ;;  %1328 = vst [vmem:[#allocation7 + $0x98] sm:$0xff] %v880_v25 }
 0x116   :  { %v949_v26 = vpop.f32.mrf.mxu0  ;;  %v1020_v27 = vpop.f32.mrf.mxu1 }
 0x117   :  { %1329 = vst [vmem:[#allocation7 + $0xa0] sm:$0xff] %v949_v26  ;;  %1331 = vst [vmem:[#allocation7 + $0xb0] sm:$0xff] %v1020_v27 }
 0x118   :  { %v951_v28 = vpop.f32.mrf.mxu0  ;;  %v1022_v29 = vpop.f32.mrf.mxu1 }
 0x119   :  { %1330 = vst [vmem:[#allocation7 + $0xa8] sm:$0xff] %v951_v28  ;;  %1332 = vst [vmem:[#allocation7 + $0xb8] sm:$0xff] %v1022_v29 }
 0x120   :  { %v1091_v30 = vpop.f32.mrf.mxu0  ;;  %v1162_v31 = vpop.f32.mrf.mxu1 }
 0x121   :  { %1333 = vst [vmem:[#allocation7 + $0xc0] sm:$0xff] %v1091_v30  ;;  %1335 = vst [vmem:[#allocation7 + $0xd0] sm:$0xff] %v1162_v31 }
 0x122   :  { %v1093_v32 = vpop.f32.mrf.mxu0  ;;  %v1164_v33 = vpop.f32.mrf.mxu1 }
 0x123   :  { %1334 = vst [vmem:[#allocation7 + $0xc8] sm:$0xff] %v1093_v32  ;;  %1336 = vst [vmem:[#allocation7 + $0xd8] sm:$0xff] %v1164_v33 }
 0x12a   :  { %v1233_v34 = vpop.f32.mrf.mxu0  ;;  %v1304_v35 = vpop.f32.mrf.mxu1 }
 0x12b   :  { %1337 = vst [vmem:[#allocation7 + $0xe0] sm:$0xff] %v1233_v34  ;;  %1339 = vst [vmem:[#allocation7 + $0xf0] sm:$0xff] %v1304_v35 }
 0x12c   :  { %v1235_v36 = vpop.f32.mrf.mxu0  ;;  %v1306_v37 = vpop.f32.mrf.mxu1 }
 0x12d   :  { %1338 = vst [vmem:[#allocation7 + $0xe8] sm:$0xff] %v1235_v36  ;;  %1340 = vst [vmem:[#allocation7 + $0xf8] sm:$0xff] %v1306_v37 }
 0x12e   :  { %1431 = shalt.err (!%p1428_p0)
}
 0x12f   :  { %1350 = dma.vmem_to_hbm [thread:$0]  %s1348_s1, 4096, %s1528_s2, [#allocation4]  }
 0x130   :  { %1444 = dma.done.wait [#allocation4], 4096  }
 0x131   :  { %1445 = vsyncadd [#allocation4], 4294963200 }
 0x132   :  { %1354 = vsyncpa [#allocation3], 1 }
 0x133   :  { %1355 = vsyncpa [#allocation6], 1 }
 0x134   :  { %1356 = vsyncpa [#allocation4], 1 }

</bundles_post_ra>
